<compile_context>
chip_gen: v7x
topology: tpu7x:2x2x1
jax: 0.10.0
libtpu: 0.0.40
codegen_flags: <defaults>
</compile_context>

<pallas_src>
import functools

import jax
import jax.numpy as jnp
from jax.experimental import pallas as pl
from jax.experimental.pallas import tpu as pltpu

ALPHA = 0.25
GAMMA = 2
SCALE = 60.0
LANES = 128

# Conservative column-block for the non-lane-aligned (1, n) fallback: sized
# assuming worst-case 8x sublane padding of a 1-row layout, so <= ~1 MiB of
# VMEM per operand block even in that case.
UNALIGNED_BLOCK_COLS = 32768  # multiple of 128


def _round_up(x, m):
    return ((x + m - 1) // m) * m


def _chip_config():
    """Per-generation tiling parameters: (max_block_rows, vmem_limit_bytes, multi_tc)."""
    # Safe default (v5e-class: 128 MiB VMEM, 16 MiB scoped default, 1 TC).
    max_rows, vmem_limit, multi_tc = 4096, 28 << 20, False
    try:
        kind = jax.devices()[0].device_kind.lower()
    except Exception:
        kind = ""
    if "v6" in kind:
        # v6e: 128 MiB VMEM, ~1.4 TB/s HBM, 1 TC -> bigger blocks amortize the
        # ~0.35 us per-grid-step overhead.
        max_rows, vmem_limit, multi_tc = 8192, 32 << 20, False
    elif "v7" in kind or "7x" in kind:
        # v7x: 64 MiB VMEM/TC, ~3.2 TB/s HBM, 2 TCs -> keep blocks VMEM-safe and
        # make sure both TensorCores get grid work.
        max_rows, vmem_limit, multi_tc = 8192, 40 << 20, True
    return max_rows, vmem_limit, multi_tc


def _focal_loss_kernel(x_ref, t_ref, o_ref, *, alpha, gamma, scale):
    # Inputs are DMA'd in their original dtype; upcast to f32 in-kernel
    # (f32 internal math is required on v5e: no bf16 VALU/EUP).
    x = x_ref[...].astype(jnp.float32)
    t = t_ref[...].astype(jnp.float32)

    pos = t >= 0.4
    # Fused single-log form. Matches the two-branch reference because the
    # deselected branch of the reference multiplies its log by an exact 0.
    #   p_t: argument of the log     (x     if pos else 1 - x)
    #   q_t: modulating-factor base  (1 - x if pos else x)
    #   a_t: alpha weighting         (alpha if pos else 1 - alpha)
    p_t = jnp.where(pos, x, 1.0 - x)
    q_t = 1.0 - p_t                       # saves a second vsel per vreg
    a_t = jnp.where(pos, alpha, 1.0 - alpha)
    qg = q_t * q_t if gamma == 2 else q_t ** gamma
    loss = (-a_t) * qg * jnp.log(p_t + 1e-08)
    o_ref[...] = (loss * scale).astype(o_ref.dtype)


def focal_loss(inputs, targets, alpha=ALPHA, gamma=GAMMA, reduce=False, weight=1):
    """Matches FocalLoss.forward: elementwise loss * 60 (reduce/weight are dead args)."""
    assert inputs.shape == targets.shape
    orig_shape = inputs.shape
    out_dtype = inputs.dtype
    n = int(inputs.size)
    if n == 0:
        return jnp.zeros(orig_shape, out_dtype)

    max_rows, vmem_limit, multi_tc = _chip_config()

    x = inputs.reshape(-1)
    t = targets.reshape(-1)

    if n % LANES == 0:
        # Lane-dense (rows, 128) view -- a free reshape, no padding needed.
        rows = n // LANES
        arr_shape = (rows, LANES)
        x2 = x.reshape(arr_shape)
        t2 = t.reshape(arr_shape)
        if multi_tc and rows > 256:
            # Guarantee >= 2 grid steps so both v7x TensorCores get work.
            # Multiple of 16 keeps bf16 (16, 128) block divisibility legal.
            block_rows = min(max_rows, _round_up(pl.cdiv(rows, 2), 16))
        elif rows > max_rows:
            block_rows = max_rows           # multiple of 16; last block may be partial
        else:
            block_rows = rows               # single block == full array dims (always legal)
        block = (block_rows, LANES)
        grid = (pl.cdiv(rows, block_rows),)
        index_map = lambda i: (i, 0)
    else:
        # Non-128-aligned fallback: (1, n) view tiled along the lane dim.
        # Partial last block is clipped by the DMA -> no jnp.pad / out[:n]
        # extra HBM passes. Slightly less vreg-efficient layout, but the
        # kernel is HBM-bound and this path is the rare edge case.
        arr_shape = (1, n)
        x2 = x.reshape(arr_shape)
        t2 = t.reshape(arr_shape)
        block_cols = n if n <= UNALIGNED_BLOCK_COLS else UNALIGNED_BLOCK_COLS
        block = (1, block_cols)
        grid = (pl.cdiv(n, block_cols),)
        index_map = lambda i: (0, i)

    kernel = functools.partial(
        _focal_loss_kernel, alpha=float(alpha), gamma=gamma, scale=SCALE
    )

    bytes_accessed = n * (
        2 * jnp.dtype(inputs.dtype).itemsize + jnp.dtype(out_dtype).itemsize
    )

    # NOTE: on v7x one could additionally sweep pipeline_mode=pl.Buffered(3) on
    # the input specs; omitted here since it needs a measured sweep to justify.
    out2 = pl.pallas_call(
        kernel,
        out_shape=jax.ShapeDtypeStruct(arr_shape, out_dtype),
        grid_spec=pltpu.PrefetchScalarGridSpec(
            num_scalar_prefetch=0,
            grid=grid,
            in_specs=[
                pl.BlockSpec(block, index_map),
                pl.BlockSpec(block, index_map),
            ],
            out_specs=pl.BlockSpec(block, index_map),
        ),
        compiler_params=pltpu.CompilerParams(
            dimension_semantics=("parallel",),
            vmem_limit_bytes=vmem_limit,
        ),
        cost_estimate=pl.CostEstimate(
            flops=8 * n, transcendentals=n, bytes_accessed=bytes_accessed
        ),
    )(x2, t2)

    return out2.reshape(orig_shape)


def _reference_focal_loss(inputs, targets, alpha=ALPHA, gamma=GAMMA):
    x = inputs.astype(jnp.float32)
    t = targets.astype(jnp.float32)
    pos = (t >= 0.4).astype(jnp.float32)
    loss = (
        -pos * alpha * (1.0 - x) ** gamma * jnp.log(x + 1e-08)
        - (1.0 - pos) * (1.0 - alpha) * x ** gamma * jnp.log(1.0 - x + 1e-08)
    )
    return (loss * SCALE).astype(inputs.dtype)


if __name__ == "__main__":
    key = jax.random.PRNGKey(0)
    cases = [
        ((2, 4, 16, 16), jnp.float32, 1e-4),   # primary case, lane-aligned, single block
        ((3, 5, 7), jnp.float32, 1e-4),        # unaligned -> (1, n) path, no pad/slice
        ((5, 7001), jnp.float32, 1e-4),        # unaligned, > one col-block (partial last)
        ((36, 125, 128), jnp.float32, 1e-4),   # rows=4500 -> multi-block / v7x TC split
        ((2, 4, 16, 16), jnp.bfloat16, 2e-2),  # in-kernel up/down-cast path
    ]
    for idx, (shape, dtype, tol) in enumerate(cases):
        k1, k2 = jax.random.split(jax.random.fold_in(key, idx))
        inputs = jax.random.uniform(
            k1, shape, jnp.float32, minval=0.01, maxval=0.99
        ).astype(dtype)
        targets = jax.random.uniform(
            k2, shape, jnp.float32, minval=0.0, maxval=1.0
        ).astype(dtype)

        out = jax.block_until_ready(focal_loss(inputs, targets))
        ref = _reference_focal_loss(inputs, targets)

        assert out.shape == shape, (out.shape, shape)
        assert out.dtype == jnp.dtype(dtype), (out.dtype, dtype)
        err = float(
            jnp.max(jnp.abs(out.astype(jnp.float32) - ref.astype(jnp.float32)))
        )
        assert jnp.allclose(
            out.astype(jnp.float32), ref.astype(jnp.float32), atol=tol, rtol=tol
        ), (shape, dtype, err)

    print("KERNEL_OK")
</pallas_src>

<mosaic_0001>
module attributes {stable_mosaic.version = 11 : i64} {
  func.func @_focal_loss_kernel(%arg0: i32, %arg1: memref<16x128xf32, #tpu.memory_space<vmem>>, %arg2: memref<16x128xf32, #tpu.memory_space<vmem>>, %arg3: memref<16x128xf32, #tpu.memory_space<vmem>>) attributes {dimension_semantics = [#tpu.dimension_semantics<parallel>], iteration_bounds = array<i64: 1>, scalar_prefetch = 0 : i64, scratch_operands = 0 : i64, tpu.core_type = #tpu.core_type<tc>, window_params = [{transform_indices = @transform_0, window_bounds = array<i64: 16, 128>}, {transform_indices = @transform_1, window_bounds = array<i64: 16, 128>}, {transform_indices = @transform_2, window_bounds = array<i64: 16, 128>}]} {
    %c0 = arith.constant 0 : index
    %c0_0 = arith.constant 0 : index
    %0 = vector.load %arg1[%c0, %c0_0] : memref<16x128xf32, #tpu.memory_space<vmem>>, vector<16x128xf32>
    %c0_1 = arith.constant 0 : index
    %c0_2 = arith.constant 0 : index
    %1 = vector.load %arg2[%c0_1, %c0_2] : memref<16x128xf32, #tpu.memory_space<vmem>>, vector<16x128xf32>
    %cst = arith.constant 4.000000e-01 : f32
    %2 = vector.broadcast %cst : f32 to vector<16x128xf32>
    %3 = arith.cmpf oge, %1, %2 : vector<16x128xf32>
    %cst_3 = arith.constant 1.000000e+00 : f32
    %4 = vector.broadcast %cst_3 : f32 to vector<16x128xf32>
    %5 = arith.subf %4, %0 : vector<16x128xf32>
    %6 = arith.select %3, %0, %5 : vector<16x128xi1>, vector<16x128xf32>
    %cst_4 = arith.constant 1.000000e+00 : f32
    %7 = vector.broadcast %cst_4 : f32 to vector<16x128xf32>
    %8 = arith.subf %7, %6 : vector<16x128xf32>
    %cst_5 = arith.constant 2.500000e-01 : f32
    %cst_6 = arith.constant 7.500000e-01 : f32
    %9 = vector.broadcast %cst_5 : f32 to vector<16x128xf32>
    %10 = vector.broadcast %cst_6 : f32 to vector<16x128xf32>
    %11 = arith.select %3, %9, %10 : vector<16x128xi1>, vector<16x128xf32>
    %12 = arith.mulf %8, %8 : vector<16x128xf32>
    %cst_7 = arith.constant 0.000000e+00 : f32
    %13 = vector.broadcast %cst_7 : f32 to vector<16x128xf32>
    %14 = arith.subf %13, %11 : vector<16x128xf32>
    %15 = arith.mulf %14, %12 : vector<16x128xf32>
    %cst_8 = arith.constant 9.99999993E-9 : f32
    %16 = vector.broadcast %cst_8 : f32 to vector<16x128xf32>
    %17 = arith.addf %6, %16 : vector<16x128xf32>
    %18 = math.log %17 : vector<16x128xf32>
    %19 = arith.mulf %15, %18 : vector<16x128xf32>
    %cst_9 = arith.constant 6.000000e+01 : f32
    %20 = vector.broadcast %cst_9 : f32 to vector<16x128xf32>
    %21 = arith.mulf %19, %20 : vector<16x128xf32>
    %c0_10 = arith.constant 0 : index
    %c0_11 = arith.constant 0 : index
    %22 = vector.load %arg3[%c0_10, %c0_11] : memref<16x128xf32, #tpu.memory_space<vmem>>, vector<16x128xf32>
    tpu.vector_store %arg3[%c0_10, %c0_11], %21 {strides = array<i32>} : memref<16x128xf32, #tpu.memory_space<vmem>>, vector<16x128xf32>,
    return
  }
  func.func @transform_0(%arg0: i32) -> (i32, i32) {
    %c0_i32 = arith.constant 0 : i32
    %c0_i32_0 = arith.constant 0 : i32
    return %arg0, %c0_i32 : i32, i32
  }
  func.func @transform_1(%arg0: i32) -> (i32, i32) {
    %c0_i32 = arith.constant 0 : i32
    %c0_i32_0 = arith.constant 0 : i32
    return %arg0, %c0_i32 : i32, i32
  }
  func.func @transform_2(%arg0: i32) -> (i32, i32) {
    %c0_i32 = arith.constant 0 : i32
    %c0_i32_0 = arith.constant 0 : i32
    return %arg0, %c0_i32 : i32, i32
  }
}

</mosaic_0001>

<bundles_post_ra>
// kernel: tpu_custom_call.1
= control target key start
LH: loop header
LB: loop body
LE: loop exit
PB: predicated region body
PF: predicated region fallthrough
CT: control target
= control target key end

     0   :  { %7 = vsyncpa [#allocation3], 0  ;;  %s238_s0 = inlined_call_operand.hbm [shape: f32[16,128], index: 0, kind: input, shape index: {}]   ;;  %s239_s1 = inlined_call_operand.hbm [shape: f32[16,128], index: 1, kind: input, shape index: {}]   ;;  %s240_s2 = inlined_call_operand.hbm [shape: f32[16,128], index: 2, kind: output, shape index: {}]  }
   0x1   :  { %8 = vsyncpa [#allocation6], 0 }
   0x2   :  { %9 = vsyncpa [#allocation4], 0  ;;  %s172_s9 = smov [#allocation2]   ;;  %s100_s13 = scalar_lea.hbm %s238_s0, 256 }
   0x3   :  { %s15_s10 = sshll.u32 %s172_s9, 4  ;;  %p101_p0 = scmp.ne.s32.totalorder %s238_s0, %s100_s13  ;;  %s16_s10 = int_to_ptr.vmem [resolvable:$true] %s15_s10 }
   0x4   :  { %p104_p1 = scmp.lt.u32.totalorder %s100_s13, %s238_s0 }
   0x6   :  { %p106_p2 = pnand %p104_p1, %p101_p0 }
   0x8   :  { %109 = shalt.err (!%p106_p2)
}
   0x9   :  { %s110_s18 = scalar_lea.vmem %s16_s10, 256  ;;  %p115_p4 = scmp.lt.s32.totalorder %s16_s10, %s16_s10 }
   0xa   :  { %p111_p3 = scmp.ne.s32.totalorder %s16_s10, %s110_s18  ;;  %p116_p5 = scmp.lt.s32.totalorder %s110_s18, %s110_s18 }
   0xc   :  { %p117_p6 = por %p116_p5, %p115_p4 }
   0xe   :  { %p118_p7 = pnand %p117_p6, %p111_p3 }
  0x10   :  { %121 = shalt.err (!%p118_p7)
}
  0x11   :  { %s173_s19 = smov 128   ;;  %s174_s20 = smov 8  }
  0x12   :  { %21 = dma.hbm_to_vmem [thread:$0]  %s238_s0, 256, %s16_s10, [#allocation3], %s173_s19, %s173_s19, %s174_s20  }
  0x13   :  { %s175_s23 = smov [#allocation5]   ;;  %s122_s27 = scalar_lea.hbm %s239_s1, 256 }
  0x14   :  { %s27_s24 = sshll.u32 %s175_s23, 4  ;;  %p123_p8 = scmp.ne.s32.totalorder %s239_s1, %s122_s27  ;;  %s28_s24 = int_to_ptr.vmem [resolvable:$true] %s27_s24 }
  0x15   :  { %p126_p9 = scmp.lt.u32.totalorder %s122_s27, %s239_s1 }
  0x17   :  { %p128_p10 = pnand %p126_p9, %p123_p8 }
  0x19   :  { %131 = shalt.err (!%p128_p10)
}
  0x1a   :  { %s132_s4 = scalar_lea.vmem %s28_s24, 256  ;;  %p137_p12 = scmp.lt.s32.totalorder %s28_s24, %s28_s24 }
  0x1b   :  { %p133_p11 = scmp.ne.s32.totalorder %s28_s24, %s132_s4  ;;  %p138_p13 = scmp.lt.s32.totalorder %s132_s4, %s132_s4 }
  0x1d   :  { %p139_p0 = por %p138_p13, %p137_p12 }
  0x1f   :  { %p140_p1 = pnand %p139_p0, %p133_p11 }
  0x21   :  { %143 = shalt.err (!%p140_p1)
}
  0x22   :  { %33 = dma.hbm_to_vmem [thread:$0]  %s239_s1, 256, %s28_s24, [#allocation6], %s173_s19, %s173_s19, %s174_s20  }
  0x23   :  { %166 = dma.done.wait [#allocation3], 256  }
  0x24   :  { %167 = vsyncadd [#allocation3], 4294967040 }
  0x25   :  { %168 = dma.done.wait [#allocation6], 256  }
  0x26   :  { %169 = vsyncadd [#allocation6], 4294967040  ;;  %v40_v0 = vld [vmem:[#allocation2] sm:$0xff]  ;;  %v42_v1 = vld [vmem:[#allocation5] sm:$0xff]  ;;  %v176_v11 = vmov 0.75   ;;  %s177_s1 = smov [#allocation7]  }
  0x27   :  { %v41_v2 = vld [vmem:[#allocation2 + $0x8] sm:$0xff]  ;;  %vm44_vm0 = vcmp.ge.f32.partialorder %v42_v1, 0.4  ;;  %v46_v3 = vsub.f32 1.0, %v40_v0  ;;  %v43_v4 = vld [vmem:[#allocation5 + $0x8] sm:$0xff]  ;;  %s77_s6 = sshll.u32 %s177_s1, 4  ;;  %s78_s6 = int_to_ptr.vmem [resolvable:$true] %s77_s6 }
  0x28   :  { %v47_v5 = vsub.f32 1.0, %v41_v2  ;;  %vm45_vm1 = vcmp.ge.f32.partialorder %v43_v4, 0.4  ;;  %v52_v12 = vsel %vm44_vm0, 0.25, %v176_v11  ;;  %s144_s7 = scalar_lea.vmem %s78_s6, 256  ;;  %p149_p3 = scmp.lt.s32.totalorder %s78_s6, %s78_s6 }
  0x29   :  { %v48_v6 = vsel %vm44_vm0, %v40_v0, %v46_v3  ;;  %v53_v14 = vsel %vm45_vm1, 0.25, %v176_v11  ;;  %v56_v16 = vsub.f32 0.0, %v52_v12  ;;  %p145_p2 = scmp.ne.s32.totalorder %s78_s6, %s144_s7  ;;  %p150_p4 = scmp.lt.s32.totalorder %s144_s7, %s144_s7 }
  0x2a   :  { %v49_v7 = vsel %vm45_vm1, %v41_v2, %v47_v5  ;;  %v60_v8 = vadd.f32 1e-08, %v48_v6  ;;  %v50_v10 = vsub.f32 1.0, %v48_v6  ;;  %v57_v18 = vsub.f32 0.0, %v53_v14 }
  0x2b   :  { %v61_v9 = vadd.f32 1e-08, %v49_v7  ;;  %v51_v13 = vsub.f32 1.0, %v49_v7  ;;  %p151_p5 = por %p150_p4, %p149_p3 }
  0x2c   :  { %96 = vlog2.f32 %v60_v8  ;;  %v54_v15 = vmul.f32 %v50_v10, %v50_v10 }
  0x2d   :  { %98 = vlog2.f32 %v61_v9  ;;  %v55_v17 = vmul.f32 %v51_v13, %v51_v13  ;;  %p152_p6 = pnand %p151_p5, %p145_p2 }
  0x2e   :  { %v58_v19 = vmul.f32 %v56_v16, %v54_v15 }
  0x2f   :  { %v59_v21 = vmul.f32 %v57_v18, %v55_v17 }
  0x36   :  { %v97_v20 = vpop.eup %96 }
  0x37   :  { %v99_v22 = vpop.eup %98  ;;  %v63_v23 = vmul.f32 0.6931472, %v97_v20 }
  0x38   :  { %v65_v24 = vmul.f32 0.6931472, %v99_v22 }
  0x39   :  { %v66_v25 = vmul.f32 %v63_v23, %v58_v19 }
  0x3a   :  { %v67_v26 = vmul.f32 %v65_v24, %v59_v21 }
  0x3b   :  { %v68_v27 = vmul.f32 60.0, %v66_v25 }
  0x3c   :  { %v69_v28 = vmul.f32 60.0, %v67_v26 }
  0x3d   :  { %70 = vst [vmem:[#allocation7] sm:$0xff] %v68_v27 }
  0x3e   :  { %71 = vst [vmem:[#allocation7 + $0x8] sm:$0xff] %v69_v28 }
  0x3f   :  { %155 = shalt.err (!%p152_p6)
}
  0x40   :  { %s156_s10 = scalar_lea.hbm %s240_s2, 256 }
  0x41   :  { %p157_p7 = scmp.ne.s32.totalorder %s240_s2, %s156_s10  ;;  %p160_p8 = scmp.lt.u32.totalorder %s156_s10, %s240_s2 }
  0x43   :  { %p162_p9 = pnand %p160_p8, %p157_p7 }
  0x45   :  { %165 = shalt.err (!%p162_p9)
}
  0x46   :  { %83 = dma.vmem_to_hbm [thread:$0]  %s78_s6, 256, %s240_s2, [#allocation4], %s173_s19, %s173_s19, %s174_s20  }
  0x47   :  { %170 = dma.done.wait [#allocation4], 256  }
  0x48   :  { %171 = vsyncadd [#allocation4], 4294967040 }
  0x49   :  { %87 = vsyncpa [#allocation3], 1 }
  0x4a   :  { %88 = vsyncpa [#allocation6], 1 }
  0x4b   :  { %89 = vsyncpa [#allocation4], 1 }

</bundles_post_ra>
